<compile_context>
chip_gen: v7x
topology: tpu7x:2x2x1
jax: 0.10.0
libtpu: 0.0.40
codegen_flags: <defaults>
</compile_context>

<pallas_src>
import jax
import jax.numpy as jnp
import numpy as np
from jax.experimental import pallas as pl
from jax.experimental.pallas import tpu as pltpu


def _round_up(x, m):
    return ((x + m - 1) // m) * m


# ------------------------------- kernels ------------------------------------


def router_kernel(x_ref, ws_ref, bs_ref, routes_ref, pmax_ref):
    """Fused router: logits -> (argmax index, max softmax prob)."""
    logits = jnp.dot(x_ref[...], ws_ref[...], preferred_element_type=jnp.float32)
    logits = logits + bs_ref[...]
    n_e = logits.shape[-1]
    m = jnp.max(logits, axis=-1, keepdims=True)
    denom = jnp.sum(jnp.exp(logits - m), axis=-1, keepdims=True)
    # max softmax probability = exp(m - m) / denom = 1 / denom
    pmax_ref[...] = 1.0 / denom
    # first index attaining the max (matches torch.max / jnp.argmax tie-breaking)
    idx = jax.lax.broadcasted_iota(jnp.int32, logits.shape, dimension=1)
    routes_ref[...] = jnp.min(jnp.where(logits >= m, idx, n_e),
                              axis=-1, keepdims=True)


def moe_ffn_kernel(counts_ref, xg_ref, w1_ref, b1_ref, w2_ref, b2_ref, o_ref):
    """Dense expert FFN on one (rows, D) tile of this expert's gathered tokens.

    counts_ref (SMEM, scalar-prefetched) holds the number of valid (non-padded)
    rows per expert; tiles entirely past that count skip both matmuls.

    x / W1 / W2 may be bf16 (MXU operands); accumulation, bias add, gelu and the
    output stay in f32 so elementwise math never runs in bf16 (v5e-friendly).
    """
    e = pl.program_id(0)
    r = pl.program_id(1)
    tr = o_ref.shape[0]
    have_work = counts_ref[e] > r * tr

    @pl.when(have_work)
    def _():
        x = xg_ref[...]
        h = jnp.dot(x, w1_ref[0], preferred_element_type=jnp.float32) + b1_ref[0]
        h = jax.nn.gelu(h, approximate=False)      # exact erf = nn.GELU() default
        y = jnp.dot(h.astype(w2_ref.dtype), w2_ref[0],
                    preferred_element_type=jnp.float32)
        o_ref[...] = (y + b2_ref[0]).astype(o_ref.dtype)

    @pl.when(jnp.logical_not(have_work))
    def _():
        o_ref[...] = jnp.zeros_like(o_ref)
    # TODO(synk): for large F on v7x (64 MiB VMEM), tile the F dimension with an
    # inner loop / third grid axis instead of materializing the full (rows, F) h.


# ------------------------------ wrappers -------------------------------------


def switch_router(x2d, ws, bs, *, tm):
    """x2d: (N_pad, D) with N_pad % tm == 0.  Returns routes (N_pad,), pmax (N_pad,)."""
    n_pad, d = x2d.shape
    n_experts = ws.shape[1]
    routes, pmax = pl.pallas_call(
        router_kernel,
        out_shape=(jax.ShapeDtypeStruct((n_pad, 1), jnp.int32),
                   jax.ShapeDtypeStruct((n_pad, 1), jnp.float32)),
        grid_spec=pltpu.PrefetchScalarGridSpec(
            num_scalar_prefetch=0,
            grid=(n_pad // tm,),
            in_specs=[
                pl.BlockSpec((tm, d), lambda m: (m, 0)),
                pl.BlockSpec((d, n_experts), lambda m: (0, 0)),
                pl.BlockSpec((1, n_experts), lambda m: (0, 0)),
            ],
            out_specs=[
                pl.BlockSpec((tm, 1), lambda m: (m, 0)),
                pl.BlockSpec((tm, 1), lambda m: (m, 0)),
            ],
        ),
        compiler_params=pltpu.CompilerParams(dimension_semantics=("parallel",)),
    )(x2d, ws, bs)
    return routes[:, 0], pmax[:, 0]


def grouped_moe_ffn(xg, counts, w1, b1, w2, b2, *, tr):
    """xg: (E * cap_rows, D) tokens grouped by expert (padded).

    counts: (E,) int32 number of valid rows per expert (tiles past it are skipped).
    Returns f32 (E * cap_rows, D).
    """
    rows, d = xg.shape
    n_experts, _, f = w1.shape
    cap_rows = rows // n_experts
    n_rt = cap_rows // tr
    return pl.pallas_call(
        moe_ffn_kernel,
        out_shape=jax.ShapeDtypeStruct((rows, d), jnp.float32),
        grid_spec=pltpu.PrefetchScalarGridSpec(
            num_scalar_prefetch=1,               # counts -> SMEM
            # expert axis outermost -> W1[e]/W2[e] are DMA'd once per expert;
            # inner axis walks this expert's row tiles.
            grid=(n_experts, n_rt),
            in_specs=[
                pl.BlockSpec((tr, d), lambda e, r, c: (e * n_rt + r, 0)),  # x rows
                pl.BlockSpec((1, d, f), lambda e, r, c: (e, 0, 0)),        # W1[e]
                pl.BlockSpec((1, 1, f), lambda e, r, c: (e, 0, 0)),        # b1[e]
                pl.BlockSpec((1, f, d), lambda e, r, c: (e, 0, 0)),        # W2[e]
                pl.BlockSpec((1, 1, d), lambda e, r, c: (e, 0, 0)),        # b2[e]
            ],
            out_specs=pl.BlockSpec((tr, d), lambda e, r, c: (e * n_rt + r, 0)),
        ),
        compiler_params=pltpu.CompilerParams(
            # Both axes independent; expert axis (size E) splits across the two
            # TensorCores on v7x.
            dimension_semantics=("parallel", "parallel"),
            vmem_limit_bytes=32 * 1024 * 1024,
        ),
    )(counts, xg, w1, b1, w2, b2)


# --------------------------- dispatch / combine glue --------------------------


def _build_dispatch(routes, pmax, n_experts, capacity, cap_rows, drop_tokens):
    """Per-expert gather indices (E*cap_rows,), slot validity, kept mask, counts."""
    n_tok = routes.shape[0]
    slot = jnp.arange(cap_rows, dtype=jnp.int32)
    gather, valid, counts = [], [], []
    for e in range(n_experts):
        in_e = routes == e
        count = jnp.sum(in_e.astype(jnp.int32))
        # priority order: this expert's tokens first, by descending route prob.
        # TODO(synk): non-priority drop path (torch.randperm shuffle) not implemented.
        key = jnp.where(in_e, pmax, -jnp.inf)
        order = jnp.argsort(-key).astype(jnp.int32)
        if cap_rows > n_tok:
            order = jnp.concatenate(
                [order, jnp.zeros((cap_rows - n_tok,), jnp.int32)])
        limit = jnp.minimum(count, capacity) if drop_tokens else count
        gather.append(order[:cap_rows])
        valid.append(slot < limit)
        counts.append(limit)
    gather_idx = jnp.stack(gather).reshape(-1)                 # (E*cap_rows,)
    slot_valid = jnp.stack(valid).reshape(-1)                  # (E*cap_rows,) bool
    counts = jnp.stack(counts).astype(jnp.int32)               # (E,)
    kept = jnp.zeros((n_tok,), jnp.float32).at[gather_idx].add(
        slot_valid.astype(jnp.float32))
    return gather_idx, slot_valid, kept, counts


def _kept_mask(routes, pmax, n_experts, capacity, drop_tokens):
    """Reference-side kept mask (same priority-drop rule)."""
    n_tok = routes.shape[0]
    if not drop_tokens:
        return jnp.ones((n_tok,), jnp.float32)
    kept = jnp.zeros((n_tok,), bool)
    for e in range(n_experts):
        in_e = routes == e
        key = jnp.where(in_e, pmax, -jnp.inf)
        order = jnp.argsort(-key)
        rank = jnp.zeros((n_tok,), jnp.int32).at[order].set(
            jnp.arange(n_tok, dtype=jnp.int32))
        kept = kept | (in_e & (rank < capacity))
    return kept.astype(jnp.float32)


def switch_feedforward(x, params, *, capacity_factor=1.25, drop_tokens=True,
                       use_bf16=True, tm_max=512, tr_max=512):
    b, s, d = x.shape
    n_tok = b * s
    n_experts = params["ws"].shape[1]
    x2d = x.reshape(n_tok, d).astype(jnp.float32)

    # ---- router (fused softmax-max + argmax), remainder handled by padding ----
    tm = min(tm_max, _round_up(n_tok, 8))
    n_pad = _round_up(n_tok, tm)
    x_r = x2d if n_pad == n_tok else jnp.pad(x2d, ((0, n_pad - n_tok), (0, 0)))
    routes, pmax = switch_router(x_r, params["ws"], params["bs"], tm=tm)
    routes, pmax = routes[:n_tok], pmax[:n_tok]

    # ---- capacity selection + grouped dispatch (JAX glue) ----
    if drop_tokens:
        capacity = int(capacity_factor * n_tok / n_experts)
        cap_rows = max(8, _round_up(min(capacity, n_tok), 8))
    else:
        capacity = n_tok
        cap_rows = _round_up(n_tok, 8)
    if cap_rows > tr_max:
        tr = tr_max
        cap_rows = _round_up(cap_rows, tr)
    else:
        tr = cap_rows
    gidx, gvalid, kept, counts = _build_dispatch(
        routes, pmax, n_experts, capacity, cap_rows, drop_tokens)

    cdt = jnp.bfloat16 if use_bf16 else jnp.float32
    xg = jnp.where(gvalid[:, None], x2d[gidx], 0.0).astype(cdt)
    yg = grouped_moe_ffn(xg, counts,
                         params["w1"].astype(cdt), params["b1"],
                         params["w2"].astype(cdt), params["b2"], tr=tr)

    # ---- combine: scatter expert outputs, identity for dropped, scale by pmax ----
    yg = jnp.where(gvalid[:, None], yg, 0.0)
    out2d = jnp.zeros((n_tok, d), jnp.float32).at[gidx].add(yg)
    out2d = out2d + (1.0 - kept)[:, None] * x2d
    out2d = out2d * pmax[:, None]
    return out2d.reshape(b, s, d).astype(x.dtype)


# ----------------------------- reference (JAX) --------------------------------


def reference(x, params, *, capacity_factor=1.25, drop_tokens=True, use_bf16=True):
    b, s, d = x.shape
    n_tok = b * s
    n_experts = params["ws"].shape[1]
    cdt = jnp.bfloat16 if use_bf16 else jnp.float32
    x2d = x.reshape(n_tok, d).astype(jnp.float32)
    logits = x2d @ params["ws"] + params["bs"]
    p = jax.nn.softmax(logits, axis=-1)
    routes = jnp.argmax(p, axis=-1).astype(jnp.int32)
    pmax = jnp.max(p, axis=-1)
    capacity = int(capacity_factor * n_tok / n_experts) if drop_tokens else n_tok
    kept = _kept_mask(routes, pmax, n_experts, capacity, drop_tokens)
    out = jnp.zeros_like(x2d)
    xc = x2d.astype(cdt)
    for e in range(n_experts):
        h = jnp.dot(xc, params["w1"][e].astype(cdt),
                    preferred_element_type=jnp.float32) + params["b1"][e]
        h = jax.nn.gelu(h, approximate=False)
        y = jnp.dot(h.astype(cdt), params["w2"][e].astype(cdt),
                    preferred_element_type=jnp.float32) + params["b2"][e]
        m = ((routes == e).astype(jnp.float32) * kept)[:, None]
        out = out + m * y
    out = out + (1.0 - kept)[:, None] * x2d
    out = out * pmax[:, None]
    return out.reshape(b, s, d)


# --------------------------------- main ---------------------------------------


def init_params(key, d_model, d_ff, n_experts):
    ks = jax.random.split(key, 6)
    scale = 0.02
    return dict(
        ws=jax.random.normal(ks[0], (d_model, n_experts), jnp.float32) * scale,
        bs=jax.random.normal(ks[1], (1, n_experts), jnp.float32) * scale,
        w1=jax.random.normal(ks[2], (n_experts, d_model, d_ff), jnp.float32) * scale,
        b1=jax.random.normal(ks[3], (n_experts, 1, d_ff), jnp.float32) * scale,
        w2=jax.random.normal(ks[4], (n_experts, d_ff, d_model), jnp.float32) * scale,
        b2=jax.random.normal(ks[5], (n_experts, 1, d_model), jnp.float32) * scale,
    )


if __name__ == "__main__":
    # batch, seq, hidden, intermediate, experts  (toy shapes; real models should
    # pad D/F to multiples of 256 for full MXU utilization on v6e/v7x)
    B, S, D, F, E = 2, 64, 32, 64, 4
    key = jax.random.PRNGKey(0)
    kx, kp = jax.random.split(key)
    x = jax.random.normal(kx, (B, S, D), jnp.float32)
    params = init_params(kp, D, F, E)

    out = switch_feedforward(x, params, capacity_factor=1.25,
                             drop_tokens=True, use_bf16=True)
    out = jax.block_until_ready(out)

    ref = jax.block_until_ready(
        reference(x, params, capacity_factor=1.25, drop_tokens=True,
                  use_bf16=True))

    assert out.shape == (B, S, D)
    np.testing.assert_allclose(np.asarray(out), np.asarray(ref),
                               rtol=5e-3, atol=1e-4)
    print("KERNEL_OK")
</pallas_src>

<mosaic_0001>
module attributes {stable_mosaic.version = 11 : i64} {
  func.func @router_kernel(%arg0: i32, %arg1: memref<128x32xf32, #tpu.memory_space<vmem>>, %arg2: memref<32x4xf32, #tpu.memory_space<vmem>>, %arg3: memref<1x4xf32, #tpu.memory_space<vmem>>, %arg4: memref<128x1xi32, #tpu.memory_space<vmem>>, %arg5: memref<128x1xf32, #tpu.memory_space<vmem>>) attributes {dimension_semantics = [#tpu.dimension_semantics<parallel>], iteration_bounds = array<i64: 1>, scalar_prefetch = 0 : i64, scratch_operands = 0 : i64, tpu.core_type = #tpu.core_type<tc>, window_params = [{transform_indices = @transform_0, window_bounds = array<i64: 128, 32>}, {pipeline_mode = #tpu.pipeline_mode<synchronous>, transform_indices = @transform_1, window_bounds = array<i64: 32, 4>}, {pipeline_mode = #tpu.pipeline_mode<synchronous>, transform_indices = @transform_2, window_bounds = array<i64: 1, 4>}, {transform_indices = @transform_3, window_bounds = array<i64: 128, 1>}, {transform_indices = @transform_4, window_bounds = array<i64: 128, 1>}]} {
    %c0 = arith.constant 0 : index
    %c0_0 = arith.constant 0 : index
    %0 = vector.load %arg1[%c0, %c0_0] : memref<128x32xf32, #tpu.memory_space<vmem>>, vector<128x32xf32>
    %c0_1 = arith.constant 0 : index
    %c0_2 = arith.constant 0 : index
    %1 = vector.load %arg2[%c0_1, %c0_2] : memref<32x4xf32, #tpu.memory_space<vmem>>, vector<32x4xf32>
    %cst = arith.constant dense<0.000000e+00> : vector<128x4xf32>
    %2 = tpu.matmul %0, %1, %cst {dimension_numbers = #tpu.dot_dimension_numbers<[1], [0], [0], [1], [0, 0, 1, 1], [], []>} : vector<128x32xf32>, vector<32x4xf32>, vector<128x4xf32> -> vector<128x4xf32>
    %c0_3 = arith.constant 0 : index
    %c0_4 = arith.constant 0 : index
    %3 = vector.load %arg3[%c0_3, %c0_4] : memref<1x4xf32, #tpu.memory_space<vmem>>, vector<1x4xf32>
    %4 = vector.broadcast %3 : vector<1x4xf32> to vector<128x4xf32>
    %5 = arith.addf %2, %4 : vector<128x4xf32>
    %cst_5 = arith.constant dense<0xFF800000> : vector<128xf32>
    %6 = vector.multi_reduction <maximumf>, %5, %cst_5 [1] : vector<128x4xf32> to vector<128xf32>
    %7 = vector.shape_cast %6 : vector<128xf32> to vector<128x1xf32>
    %8 = vector.broadcast %7 : vector<128x1xf32> to vector<128x4xf32>
    %9 = arith.subf %5, %8 : vector<128x4xf32>
    %10 = math.exp %9 : vector<128x4xf32>
    %cst_6 = arith.constant dense<0.000000e+00> : vector<128xf32>
    %11 = vector.multi_reduction <add>, %10, %cst_6 [1] : vector<128x4xf32> to vector<128xf32>
    %12 = vector.shape_cast %11 : vector<128xf32> to vector<128x1xf32>
    %cst_7 = arith.constant 1.000000e+00 : f32
    %13 = vector.broadcast %cst_7 : f32 to vector<128x1xf32>
    %14 = arith.divf %13, %12 : vector<128x1xf32>
    %c0_8 = arith.constant 0 : index
    %c0_9 = arith.constant 0 : index
    %15 = vector.load %arg5[%c0_8, %c0_9] : memref<128x1xf32, #tpu.memory_space<vmem>>, vector<128x1xf32>
    tpu.vector_store %arg5[%c0_8, %c0_9], %14 {strides = array<i32>} : memref<128x1xf32, #tpu.memory_space<vmem>>, vector<128x1xf32>,
    %16 = tpu.iota {dimensions = array<i32: 1>} : vector<128x4xi32>
    %17 = vector.broadcast %7 : vector<128x1xf32> to vector<128x4xf32>
    %18 = arith.cmpf oge, %5, %17 : vector<128x4xf32>
    %c4_i32 = arith.constant 4 : i32
    %19 = vector.broadcast %c4_i32 : i32 to vector<128x4xi32>
    %20 = arith.select %18, %16, %19 : vector<128x4xi1>, vector<128x4xi32>
    %cst_10 = arith.constant dense<2147483647> : vector<128xi32>
    %21 = vector.multi_reduction <minsi>, %20, %cst_10 [1] : vector<128x4xi32> to vector<128xi32>
    %22 = vector.shape_cast %21 : vector<128xi32> to vector<128x1xi32>
    %c0_11 = arith.constant 0 : index
    %c0_12 = arith.constant 0 : index
    %23 = vector.load %arg4[%c0_11, %c0_12] : memref<128x1xi32, #tpu.memory_space<vmem>>, vector<128x1xi32>
    tpu.vector_store %arg4[%c0_11, %c0_12], %22 {strides = array<i32>} : memref<128x1xi32, #tpu.memory_space<vmem>>, vector<128x1xi32>,
    return
  }
  func.func @transform_0(%arg0: i32) -> (i32, i32) {
    %c0_i32 = arith.constant 0 : i32
    %c0_i32_0 = arith.constant 0 : i32
    return %arg0, %c0_i32 : i32, i32
  }
  func.func @transform_1(%arg0: i32) -> (i32, i32) {
    %c0_i32 = arith.constant 0 : i32
    %c0_i32_0 = arith.constant 0 : i32
    %c0_i32_1 = arith.constant 0 : i32
    return %c0_i32, %c0_i32_0 : i32, i32
  }
  func.func @transform_2(%arg0: i32) -> (i32, i32) {
    %c0_i32 = arith.constant 0 : i32
    %c0_i32_0 = arith.constant 0 : i32
    %c0_i32_1 = arith.constant 0 : i32
    return %c0_i32, %c0_i32_0 : i32, i32
  }
  func.func @transform_3(%arg0: i32) -> (i32, i32) {
    %c0_i32 = arith.constant 0 : i32
    %c0_i32_0 = arith.constant 0 : i32
    return %arg0, %c0_i32 : i32, i32
  }
  func.func @transform_4(%arg0: i32) -> (i32, i32) {
    %c0_i32 = arith.constant 0 : i32
    %c0_i32_0 = arith.constant 0 : i32
    return %arg0, %c0_i32 : i32, i32
  }
}

</mosaic_0001>

<bundles_post_ra>
// kernel: tpu_custom_call.1
= control target key start
LH: loop header
LB: loop body
LE: loop exit
PB: predicated region body
PF: predicated region fallthrough
CT: control target
= control target key end

     0   :  { %vm43_vm0 = vcmask 261120   ;;  %vm237_vm1 = vcmask 31744   ;;  %s1508_s1 = inlined_call_operand.vmem [shape: f32[32,4], index: 1, kind: input, shape index: {}]   ;;  %s1509_s0 = inlined_call_operand.vmem [shape: f32[128,32], index: 0, kind: input, shape index: {}]   ;;  %s1510_s2 = inlined_call_operand.vmem [shape: f32[1,4], index: 2, kind: input, shape index: {}]   ;;  %s1511_s4 = inlined_call_operand.vmem [shape: f32[128,1], index: 4, kind: output, shape index: {1}]   ;;  %s1512_s3 = inlined_call_operand.vmem [shape: s32[128,1], index: 3, kind: output, shape index: {0}]  }
   0x1   :  { %v32_v0 = vld [vmem:[%s1508_s1] sm:$0xff]  ;;  %v33_v1 = vld [vmem:[%s1508_s1 + $0x8] sm:$0xff]  ;;  %v34_v2 = vld [vmem:[%s1508_s1 + $0x10] sm:$0xff] }
   0x2   :  { %v798_v3 = vpack.c.bf16 %v33_v1, %v32_v0  ;;  %v35_v4 = vld [vmem:[%s1508_s1 + $0x18] sm:$0xff]  ;;  %v16_v5 = vld [vmem:[%s1509_s0] sm:$0xff]  ;;  %v17_v8 = vld [vmem:[%s1509_s0 + $0x8] sm:$0xff] }
   0x3   :  { %v24_v6 = vld [vmem:[%s1509_s0 + $0x40] sm:$0xff]  ;;  %v802_v7 = vpack.c.bf16 %v35_v4, %v34_v2  ;;  %774 = vmatprep.mubr.msk.f32.mxu0 %vm43_vm0, %v16_v5  ;;  %v25_v9 = vld [vmem:[%s1509_s0 + $0x48] sm:$0xff]  ;;  %v18_v10 = vld [vmem:[%s1509_s0 + $0x10] sm:$0xff] }
   0x4   :  { %786 = vmatprep.mubr.msk.f32.mxu1 %vm43_vm0, %v24_v6  ;;  %799 = vmatprep.subr.bf16.mxu0 %v798_v3  ;;  %v26_v11 = vld [vmem:[%s1509_s0 + $0x50] sm:$0xff]  ;;  %v19_v12 = vld [vmem:[%s1509_s0 + $0x18] sm:$0xff]  ;;  %v20_v14 = vld [vmem:[%s1509_s0 + $0x20] sm:$0xff] }
   0x5   :  { %806 = vmatprep.subr.bf16.mxu1 %v798_v3  ;;  %801 = vmatpush3.bf16.msra.mxu0 %v798_v3  ;;  %v27_v13 = vld [vmem:[%s1509_s0 + $0x58] sm:$0xff]  ;;  %v28_v15 = vld [vmem:[%s1509_s0 + $0x60] sm:$0xff]  ;;  %v21_v16 = vld [vmem:[%s1509_s0 + $0x28] sm:$0xff] }
   0x6   :  { %808 = vmatpush3.bf16.msra.mxu1 %v798_v3  ;;  %803 = vmatprep.subr.bf16.mxu0 %v802_v7  ;;  %v29_v17 = vld [vmem:[%s1509_s0 + $0x68] sm:$0xff]  ;;  %v22_v18 = vld [vmem:[%s1509_s0 + $0x30] sm:$0xff]  ;;  %v23_v20 = vld [vmem:[%s1509_s0 + $0x38] sm:$0xff] }
   0x7   :  { %807 = vmatprep.subr.bf16.mxu1 %v802_v7  ;;  %v30_v19 = vld [vmem:[%s1509_s0 + $0x70] sm:$0xff]  ;;  %v31_v21 = vld [vmem:[%s1509_s0 + $0x78] sm:$0xff]  ;;  %v729_v22 = vld [vmem:[%s1510_s2] ss:$0 sm:$0xff] }
   0x9   :  { %805 = vmatpush3.bf16.msra.mxu0 %v802_v7 }
   0xa   :  { %809 = vmatpush3.bf16.msra.mxu1 %v802_v7  ;;  %v431_v7 = vlaneseq }
   0xc   :  { %775 = vmatmul.mubr.msk.f32.vlgmr.msra.gmra.mrb[0].mxu0 %vm43_vm0, %v17_v8  ;;  %v1042_v8 = vand.u32 127, %v431_v7 }
   0xd   :  { %787 = vmatmul.mubr.msk.f32.vlgmr.msra.gmra.mrb[0].mxu1 %vm43_vm0, %v25_v9  ;;  %777 = vmatprep.mubr.msk.f32.mxu0 %vm43_vm0, %v18_v10 }
   0xe   :  { %789 = vmatprep.mubr.msk.f32.mxu1 %vm43_vm0, %v26_v11 }
  0x10   :  { %778 = vmatmul.mubr.msk.f32.gmra.mrb[2].mxu0 %vm43_vm0, %v19_v12 }
  0x11   :  { %790 = vmatmul.mubr.msk.f32.gmra.mrb[2].mxu1 %vm43_vm0, %v27_v13  ;;  %780 = vmatprep.mubr.msk.f32.mxu0 %vm43_vm0, %v20_v14 }
  0x12   :  { %792 = vmatprep.mubr.msk.f32.mxu1 %vm43_vm0, %v28_v15 }
  0x14   :  { %781 = vmatmul.mubr.msk.f32.gmra.mrb[4].mxu0 %vm43_vm0, %v21_v16 }
  0x15   :  { %793 = vmatmul.mubr.msk.f32.gmra.mrb[4].mxu1 %vm43_vm0, %v29_v17  ;;  %783 = vmatprep.mubr.msk.f32.mxu0 %vm43_vm0, %v22_v18 }
  0x16   :  { %795 = vmatprep.mubr.msk.f32.mxu1 %vm43_vm0, %v30_v19 }
  0x18   :  { %784 = vmatmul.mubr.msk.f32.gmra.mrb[6].mxu0 %vm43_vm0, %v23_v20 }
  0x19   :  { %796 = vmatmul.mubr.msk.f32.gmra.mrb[6].mxu1 %vm43_vm0, %v31_v21 }
  0xdf   :  { %v776_v23 = vpop.f32.mrb[0].mxu0 }
  0xe0   :  { %v788_v24 = vpop.f32.mrb[0].mxu1  ;;  %v978_v25 = vadd.f32 %v776_v23, %v729_v22  ;;  %v158_v27 = vpop.f32.mrb[1].mxu0 }
  0xe1   :  { %v980_v26 = vadd.f32 %v788_v24, %v729_v22  ;;  %v198_v28 = vpop.f32.mrb[1].mxu1  ;;  %v982_v29 = vadd.f32 %v729_v22, %v158_v27 }
  0xe2   :  { %v241_v31 = vsel %vm237_vm1, %v978_v25, -inf  ;;  %v992_v38 = vadd.f32 %v729_v22, %v198_v28 }
  0xe3   :  { %v265_v30 = vsel %vm237_vm1, %v980_v26, -inf  ;;  %242 = vmax.xlane.f32.xlu0 %v241_v31  ;;  %v779_v32 = vpop.f32.mrb[2].mxu0  ;;  %v238_v40 = vsel %vm237_vm1, %v982_v29, -inf }
  0xe4   :  { %266 = vmax.xlane.f32.xlu1 %v265_v30  ;;  %v791_v33 = vpop.f32.mrb[2].mxu1  ;;  %v988_v34 = vadd.f32 %v779_v32, %v729_v22  ;;  %v168_v35 = vpop.f32.mrb[3].mxu0  ;;  %v262_v48 = vsel %vm237_vm1, %v992_v38, -inf }
  0xe5   :  { %v990_v36 = vadd.f32 %v791_v33, %v729_v22  ;;  %v208_v37 = vpop.f32.mrb[3].mxu1  ;;  %v1000_v46 = vadd.f32 %v729_v22, %v168_v35 }
  0xe6   :  { %v247_v39 = vsel %vm237_vm1, %v988_v34, -inf  ;;  %v1002_v47 = vadd.f32 %v729_v22, %v208_v37 }
  0xe7   :  { %239 = vmax.xlane.f32.xlu0 %v238_v40  ;;  %v782_v41 = vpop.f32.mrb[4].mxu0  ;;  %v271_v43 = vsel %vm237_vm1, %v990_v36, -inf  ;;  %v244_v55 = vsel %vm237_vm1, %v1000_v46, -inf }
  0xe8   :  { %248 = vmax.xlane.f32.xlu1 %v247_v39  ;;  %v794_v42 = vpop.f32.mrb[4].mxu1  ;;  %v178_v44 = vpop.f32.mrb[5].mxu0  ;;  %v1006_v51 = vadd.f32 %v782_v41, %v729_v22  ;;  %v268_v56 = vsel %vm237_vm1, %v1002_v47, -inf }
  0xe9   :  { %v218_v45 = vpop.f32.mrb[5].mxu1  ;;  %v1008_v52 = vadd.f32 %v729_v22, %v178_v44  ;;  %v1014_v57 = vadd.f32 %v794_v42, %v729_v22 }
  0xea   :  { %v1016_v58 = vadd.f32 %v729_v22, %v218_v45  ;;  %v253_v59 = vsel %vm237_vm1, %v1006_v51, -inf }
  0xeb   :  { %263 = vmax.xlane.f32.xlu0 %v262_v48  ;;  %v785_v49 = vpop.f32.mrb[6].mxu0  ;;  %v250_v60 = vsel %vm237_vm1, %v1008_v52, -inf  ;;  %v277_v63 = vsel %vm237_vm1, %v1014_v57, -inf }
  0xec   :  { %272 = vmax.xlane.f32.xlu1 %v271_v43  ;;  %v797_v50 = vpop.f32.mrb[6].mxu1  ;;  %v188_v53 = vpop.f32.mrb[7].mxu0  ;;  %v1022_v61 = vadd.f32 %v785_v49, %v729_v22  ;;  %v274_v0 = vsel %vm237_vm1, %v1016_v58, -inf }
  0xed   :  { %v228_v54 = vpop.f32.mrb[7].mxu1  ;;  %v1024_v62 = vadd.f32 %v729_v22, %v188_v53  ;;  %v1030_v1 = vadd.f32 %v797_v50, %v729_v22 }
  0xee   :  { %v1032_v2 = vadd.f32 %v729_v22, %v228_v54  ;;  %v259_v3 = vsel %vm237_vm1, %v1022_v61, -inf }
  0xef   :  { %269 = vmax.xlane.f32.xlu0 %v268_v56  ;;  %v256_v4 = vsel %vm237_vm1, %v1024_v62, -inf  ;;  %v283_v5 = vsel %vm237_vm1, %v1030_v1, -inf }
  0xf0   :  { %245 = vmax.xlane.f32.xlu1 %v244_v55  ;;  %v280_v6 = vsel %vm237_vm1, %v1032_v2, -inf }
  0xf3   :  { %251 = vmax.xlane.f32.xlu0 %v250_v60 }
  0xf4   :  { %254 = vmax.xlane.f32.xlu1 %v253_v59 }
  0xf7   :  { %275 = vmax.xlane.f32.xlu0 %v274_v0 }
  0xf8   :  { %278 = vmax.xlane.f32.xlu1 %v277_v63 }
  0xfb   :  { %257 = vmax.xlane.f32.xlu0 %v256_v4 }
  0xfc   :  { %260 = vmax.xlane.f32.xlu1 %v259_v3 }
  0xff   :  { %281 = vmax.xlane.f32.xlu0 %v280_v6 }
 0x100   :  { %284 = vmax.xlane.f32.xlu1 %v283_v5 }
 0x170   :  { %v1046_v10 = vpop.xlane.xlu0 %242 }
 0x171   :  { %v1044_v9 = vpop.xlane.xlu1 %266  ;;  %vm434_vm3 = vcmp.ge.f32.partialorder %v978_v25, %v1046_v10  ;;  %v287_v63 = vsub.f32 %v978_v25, %v1046_v10 }
 0x172   :  { %vm442_vm2 = vcmp.ge.f32.partialorder %v980_v26, %v1044_v9  ;;  %v450_v12 = vsel %vm434_vm3, %v1042_v8, 4  ;;  %v295_v56 = vsub.f32 %v980_v26, %v1044_v9 }
 0x173   :  { %v458_v11 = vsel %vm442_vm2, %v1042_v8, 4  ;;  %v1055_v13 = vsel %vm237_vm1, %v450_v12, 2147483647 }
 0x174   :  { %v1059_v15 = vpop.xlane.xlu0 %239  ;;  %v482_v16 = vshra.s32 %v1055_v13, 16  ;;  %v1063_v17 = vsel %vm237_vm1, %v458_v11, 2147483647  ;;  %v320_v7 = vmul.f32 1.442695, %v295_v56 }
 0x175   :  { %v1057_v14 = vpop.xlane.xlu1 %248  ;;  %vm433_vm5 = vcmp.ge.f32.partialorder %v982_v29, %v1059_v15  ;;  %v602_v21 = vshra.s32 %v1063_v17, 16  ;;  %v304_v11 = vmul.f32 1.442695, %v287_v63 }
 0x176   :  { %vm436_vm4 = vcmp.ge.f32.partialorder %v988_v34, %v1057_v14  ;;  %v1070_v19 = vcvt.s32.f32 %v482_v16  ;;  %v449_v20 = vsel %vm433_vm5, %v1042_v8, 4  ;;  %810 = vpow2.f32 %v320_v7 }
 0x177   :  { %v452_v18 = vsel %vm436_vm4, %v1042_v8, 4  ;;  %v1080_v24 = vsel %vm237_vm1, %v449_v20, 2147483647  ;;  %v1090_v30 = vcvt.s32.f32 %v602_v21  ;;  %v286_v21 = vsub.f32 %v982_v29, %v1059_v15 }
 0x178   :  { %485 = vmin.xlane.f32.xlu1 %v1070_v19  ;;  %v1077_v23 = vpop.xlane.xlu0 %263  ;;  %v1085_v27 = vsel %vm237_vm1, %v452_v18, 2147483647  ;;  %v467_v32 = vshra.s32 %v1080_v24, 16  ;;  %812 = vpow2.f32 %v304_v11 }
 0x179   :  { %v1074_v22 = vpop.xlane.xlu1 %272  ;;  %vm441_vm7 = vcmp.ge.f32.partialorder %v992_v38, %v1077_v23  ;;  %v512_v37 = vshra.s32 %v1085_v27, 16 }
 0x17a   :  { %vm444_vm6 = vcmp.ge.f32.partialorder %v990_v36, %v1074_v22  ;;  %v457_v31 = vsel %vm441_vm7, %v1042_v8, 4  ;;  %v1105_v40 = vcvt.s32.f32 %v467_v32 }
 0x17b   :  { %v460_v28 = vsel %vm444_vm6, %v1042_v8, 4  ;;  %v1101_v39 = vsel %vm237_vm1, %v457_v31, 2147483647  ;;  %v1114_v43 = vcvt.s32.f32 %v512_v37  ;;  %v289_v37 = vsub.f32 %v988_v34, %v1057_v14 }
 0x17c   :  { %605 = vmin.xlane.f32.xlu1 %v1090_v30  ;;  %v1097_v35 = vpop.xlane.xlu0 %269  ;;  %v1108_v41 = vsel %vm237_vm1, %v460_v28, 2147483647  ;;  %470 = vmin.xlane.f32.xlu0 %v1105_v40  ;;  %v587_v44 = vshra.s32 %v1101_v39, 16  ;;  %v302_v14 = vmul.f32 1.442695, %v286_v21 }
 0x17d   :  { %v1095_v33 = vpop.xlane.xlu1 %245  ;;  %vm443_vm9 = vcmp.ge.f32.partialorder %v1002_v47, %v1097_v35  ;;  %v632_v49 = vshra.s32 %v1108_v41, 16 }
 0x17e   :  { %vm435_vm8 = vcmp.ge.f32.partialorder %v1000_v46, %v1095_v33  ;;  %v459_v53 = vsel %vm443_vm9, %v1042_v8, 4  ;;  %v1129_v54 = vcvt.s32.f32 %v587_v44  ;;  %814 = vpow2.f32 %v302_v14 }
 0x17f   :  { %v451_v42 = vsel %vm435_vm8, %v1042_v8, 4  ;;  %v1137_v59 = vcvt.s32.f32 %v632_v49  ;;  %v1150_v5 = vsel %vm237_vm1, %v459_v53, 2147483647  ;;  %v296_v14 = vsub.f32 %v1002_v47, %v1097_v35 }
 0x180   :  { %v1119_v48 = vpop.xlane.xlu0 %251  ;;  %v1123_v50 = vsel %vm237_vm1, %v451_v42, 2147483647  ;;  %515 = vmin.xlane.f32.xlu1 %v1114_v43  ;;  %590 = vmin.xlane.f32.xlu0 %v1129_v54  ;;  %v617_v10 = vshra.s32 %v1150_v5, 16 }
 0x181   :  { %v1117_v45 = vpop.xlane.xlu1 %254  ;;  %vm437_vm11 = vcmp.ge.f32.partialorder %v1008_v52, %v1119_v48  ;;  %v497_v60 = vshra.s32 %v1123_v50, 16 }
 0x182   :  { %vm438_vm10 = vcmp.ge.f32.partialorder %v1006_v51, %v1117_v45  ;;  %v453_v26 = vsel %vm437_vm11, %v1042_v8, 4  ;;  %v1181_v32 = vcvt.s32.f32 %v617_v10 }
 0x183   :  { %v454_v55 = vsel %vm438_vm10, %v1042_v8, 4  ;;  %v1156_v6 = vcvt.s32.f32 %v497_v60  ;;  %v1170_v20 = vsel %vm237_vm1, %v453_v26, 2147483647  ;;  %v308_v26 = vmul.f32 1.442695, %v289_v37 }
 0x184   :  { %v1144_v3 = vpop.xlane.xlu0 %275  ;;  %v1147_v4 = vsel %vm237_vm1, %v454_v55, 2147483647  ;;  %635 = vmin.xlane.f32.xlu1 %v1137_v59  ;;  %v527_v15 = vshra.s32 %v1170_v20, 16  ;;  %v294_v55 = vsub.f32 %v992_v38, %v1077_v23  ;;  %v297_v38 = vsub.f32 %v990_v36, %v1074_v22 }
 0x185   :  { %v1142_v0 = vpop.xlane.xlu1 %278  ;;  %500 = vmin.xlane.f32.xlu0 %v1156_v6  ;;  %v542_v9 = vshra.s32 %v1147_v4, 16  ;;  %vm445_vm13 = vcmp.ge.f32.partialorder %v1016_v58, %v1144_v3  ;;  %v288_v36 = vsub.f32 %v1000_v46, %v1095_v33  ;;  %816 = vpow2.f32 %v308_v26  ;;  %v811_v33 = vpop.eup %810 }
 0x186   :  { %vm446_vm12 = vcmp.ge.f32.partialorder %v1014_v57, %v1142_v0  ;;  %v461_v42 = vsel %vm445_vm13, %v1042_v8, 4  ;;  %v1207_v63 = vcvt.s32.f32 %v527_v15  ;;  %v318_v37 = vmul.f32 1.442695, %v294_v55 }
 0x187   :  { %v462_v25 = vsel %vm446_vm12, %v1042_v8, 4  ;;  %v1176_v28 = vcvt.s32.f32 %v542_v9  ;;  %v1214_v7 = vsel %vm237_vm1, %v461_v42, 2147483647  ;;  %v324_v42 = vmul.f32 1.442695, %v297_v38 }
 0x188   :  { %v1164_v16 = vpop.xlane.xlu0 %257  ;;  %v1167_v18 = vsel %vm237_vm1, %v462_v25, 2147483647  ;;  %v647_v9 = vshra.s32 %v1214_v7, 16  ;;  %v291_v46 = vsub.f32 %v1006_v51, %v1117_v45  ;;  %818 = vpow2.f32 %v318_v37 }
 0x189   :  { %v1162_v12 = vpop.xlane.xlu1 %260  ;;  %545 = vmin.xlane.f32.xlu1 %v1176_v28  ;;  %vm439_vm15 = vcmp.ge.f32.partialorder %v1024_v62, %v1164_v16  ;;  %v662_v29 = vshra.s32 %v1167_v18, 16  ;;  %620 = vmin.xlane.f32.xlu0 %v1181_v32  ;;  %v306_v55 = vmul.f32 1.442695, %v288_v36  ;;  %820 = vpow2.f32 %v324_v42 }
 0x18a   :  { %vm440_vm14 = vcmp.ge.f32.partialorder %v1022_v61, %v1162_v12  ;;  %v455_v56 = vsel %vm439_vm15, %v1042_v8, 4  ;;  %v1232_v22 = vcvt.s32.f32 %v647_v9  ;;  %v322_v26 = vmul.f32 1.442695, %v296_v14 }
 0x18b   :  { %v456_v31 = vsel %vm440_vm14, %v1042_v8, 4  ;;  %v1199_v53 = vcvt.s32.f32 %v662_v29  ;;  %v312_v38 = vmul.f32 1.442695, %v291_v46  ;;  %v299_v47 = vsub.f32 %v1014_v57, %v1142_v0 }
 0x18c   :  { %v1194_v49 = vpop.xlane.xlu0 %281  ;;  %v1197_v34 = vsel %vm237_vm1, %v456_v31, 2147483647  ;;  %v1228_v31 = vsel %vm237_vm1, %v455_v56, 2147483647  ;;  %822 = vpow2.f32 %v306_v55  ;;  %v290_v51 = vsub.f32 %v1008_v52, %v1119_v48 }
 0x18d   :  { %v1192_v44 = vpop.xlane.xlu1 %284  ;;  %665 = vmin.xlane.f32.xlu1 %v1199_v53  ;;  %vm447_vm2 = vcmp.ge.f32.partialorder %v1032_v2, %v1194_v49  ;;  %v572_v25 = vshra.s32 %v1197_v34, 16  ;;  %530 = vmin.xlane.f32.xlu0 %v1207_v63  ;;  %824 = vpow2.f32 %v312_v38  ;;  %v328_v9 = vmul.f32 1.442695, %v299_v47 }
 0x18e   :  { %vm448_vm0 = vcmp.ge.f32.partialorder %v1030_v1, %v1192_v44  ;;  %v463_v23 = vsel %vm447_vm2, %v1042_v8, 4  ;;  %826 = vpow2.f32 %v322_v26  ;;  %v310_v37 = vmul.f32 1.442695, %v290_v51 }
 0x18f   :  { %v464_v60 = vsel %vm448_vm0, %v1042_v8, 4  ;;  %v1224_v11 = vcvt.s32.f32 %v572_v25  ;;  %v557_v8 = vshra.s32 %v1228_v31, 16  ;;  %v1239_v15 = vsel %vm237_vm1, %v463_v23, 2147483647  ;;  %v813_v25 = vpop.eup %812 }
 0x190   :  { %v1222_v10 = vsel %vm237_vm1, %v464_v60, 2147483647  ;;  %v677_v60 = vshra.s32 %v1239_v15, 16  ;;  %v337_v35 = vsel %vm237_vm1, %v813_v25, 0.0  ;;  %v815_v23 = vpop.eup %814  ;;  %v298_v57 = vsub.f32 %v1016_v58, %v1144_v3 }
 0x191   :  { %v692_v21 = vshra.s32 %v1222_v10, 16  ;;  %575 = vmin.xlane.f32.xlu1 %v1224_v11  ;;  %650 = vmin.xlane.f32.xlu0 %v1232_v22  ;;  %v1246_v56 = vcvt.s32.f32 %v557_v8  ;;  %v361_v52 = vsel %vm237_vm1, %v811_v33, 0.0  ;;  %v817_v48 = vpop.eup %816  ;;  %v334_v0 = vsel %vm237_vm1, %v815_v23, 0.0 }
 0x192   :  { %v1256_v45 = vcvt.s32.f32 %v677_v60  ;;  %v819_v36 = vpop.eup %818  ;;  %828 = vpow2.f32 %v328_v9  ;;  %v301_v42 = vsub.f32 %v1030_v1, %v1192_v44  ;;  %v343_v58 = vsel %vm237_vm1, %v817_v48, 0.0 }
 0x193   :  { %v1236_v29 = vcvt.s32.f32 %v692_v21  ;;  %v293_v21 = vsub.f32 %v1022_v61, %v1162_v12  ;;  %830 = vpow2.f32 %v310_v37  ;;  %v326_v61 = vmul.f32 1.442695, %v298_v57  ;;  %v821_v3 = vpop.eup %820 }
 0x194   :  { %v292_v12 = vsub.f32 %v1024_v62, %v1164_v16  ;;  %v358_v14 = vsel %vm237_vm1, %v819_v36, 0.0  ;;  %v332_v33 = vmul.f32 1.442695, %v301_v42  ;;  %v300_v1 = vsub.f32 %v1032_v2, %v1194_v49 }
 0x195   :  { %695 = vmin.xlane.f32.xlu1 %v1236_v29  ;;  %560 = vmin.xlane.f32.xlu0 %v1246_v56  ;;  %v316_v8 = vmul.f32 1.442695, %v293_v21  ;;  %v367_v44 = vsel %vm237_vm1, %v821_v3, 0.0  ;;  %v466_v3 = vand.u32 65535, %v1080_v24 }
 0x196   :  { %v823_v46 = vpop.eup %822  ;;  %v314_v55 = vmul.f32 1.442695, %v292_v12  ;;  %v330_v25 = vmul.f32 1.442695, %v300_v1  ;;  %v601_v12 = vand.u32 65535, %v1063_v17  ;;  %v586_v1 = vand.u32 65535, %v1101_v39 }
 0x197   :  { %832 = vpow2.f32 %v316_v8  ;;  %v825_v60 = vpop.eup %824  ;;  %v340_v62 = vsel %vm237_vm1, %v823_v46, 0.0  ;;  %v481_v8 = vand.u32 65535, %v1055_v13  ;;  %v511_v13 = vand.u32 65535, %v1085_v27 }
 0x198   :  { %834 = vpow2.f32 %v326_v61  ;;  %v827_v16 = vpop.eup %826  ;;  %v349_v26 = vsel %vm237_vm1, %v825_v60, 0.0  ;;  %v603_v46 = vcvt.s32.f32 %v601_v12  ;;  %v468_v17 = vcvt.s32.f32 %v466_v3 }
 0x199   :  { %338 = vadd.xlane.f32.xlu1 %v337_v35  ;;  %680 = vmin.xlane.f32.xlu0 %v1256_v45  ;;  %836 = vpow2.f32 %v332_v33  ;;  %v364_v47 = vsel %vm237_vm1, %v827_v16, 0.0  ;;  %v483_v61 = vcvt.s32.f32 %v481_v8  ;;  %v631_v60 = vand.u32 65535, %v1108_v41 }
 0x19a   :  { %838 = vpow2.f32 %v314_v55  ;;  %v496_v16 = vand.u32 65535, %v1123_v50  ;;  %v616_v50 = vand.u32 65535, %v1150_v5 }
 0x19b   :  { %840 = vpow2.f32 %v330_v25  ;;  %v633_v25 = vcvt.s32.f32 %v631_v60 }
 0x19c   :  { %v829_v38 = vpop.eup %828 }
 0x19d   :  { %362 = vadd.xlane.f32.xlu1 %v361_v52  ;;  %335 = vadd.xlane.f32.xlu0 %v334_v0  ;;  %v831_v51 = vpop.eup %830  ;;  %v373_v2 = vsel %vm237_vm1, %v829_v38, 0.0  ;;  %v541_v38 = vand.u32 65535, %v1147_v4  ;;  %v526_v4 = vand.u32 65535, %v1170_v20  ;;  %v646_v20 = vand.u32 65535, %v1214_v7 }
 0x19e   :  { %v346_v35 = vsel %vm237_vm1, %v831_v51, 0.0  ;;  %v556_v7 = vand.u32 65535, %v1228_v31 }
 0x19f   :  { %v543_v51 = vcvt.s32.f32 %v541_v38 }
 0x1a1   :  { %344 = vadd.xlane.f32.xlu1 %v343_v58  ;;  %359 = vadd.xlane.f32.xlu0 %v358_v14  ;;  %v833_v49 = vpop.eup %832 }
 0x1a2   :  { %v835_v23 = vpop.eup %834  ;;  %v355_v9 = vsel %vm237_vm1, %v833_v49, 0.0  ;;  %v618_v49 = vcvt.s32.f32 %v616_v50 }
 0x1a3   :  { %v837_v21 = vpop.eup %836  ;;  %v370_v37 = vsel %vm237_vm1, %v835_v23, 0.0 }
 0x1a4   :  { %v839_v57 = vpop.eup %838  ;;  %v379_v52 = vsel %vm237_vm1, %v837_v21, 0.0 }
 0x1a5   :  { %368 = vadd.xlane.f32.xlu1 %v367_v44  ;;  %341 = vadd.xlane.f32.xlu0 %v340_v62  ;;  %v352_v48 = vsel %vm237_vm1, %v839_v57, 0.0  ;;  %v841_v0 = vpop.eup %840  ;;  %v513_v44 = vcvt.s32.f32 %v511_v13  ;;  %v588_v62 = vcvt.s32.f32 %v586_v1 }
 0x1a6   :  { %v376_v36 = vsel %vm237_vm1, %v841_v0, 0.0 }
 0x1a9   :  { %350 = vadd.xlane.f32.xlu1 %v349_v26  ;;  %365 = vadd.xlane.f32.xlu0 %v364_v47  ;;  %v498_v26 = vcvt.s32.f32 %v496_v16 }
 0x1ad   :  { %374 = vadd.xlane.f32.xlu1 %v373_v2  ;;  %347 = vadd.xlane.f32.xlu0 %v346_v35  ;;  %v661_v2 = vand.u32 65535, %v1167_v18  ;;  %v571_v18 = vand.u32 65535, %v1197_v34  ;;  %v691_v34 = vand.u32 65535, %v1222_v10  ;;  %v558_v10 = vcvt.s32.f32 %v556_v7 }
 0x1af   :  { %v663_v23 = vcvt.s32.f32 %v661_v2  ;;  %v573_v57 = vcvt.s32.f32 %v571_v18 }
 0x1b1   :  { %356 = vadd.xlane.f32.xlu1 %v355_v9  ;;  %371 = vadd.xlane.f32.xlu0 %v370_v37 }
 0x1b5   :  { %380 = vadd.xlane.f32.xlu1 %v379_v52  ;;  %353 = vadd.xlane.f32.xlu0 %v352_v48 }
 0x1b9   :  { %377 = vadd.xlane.f32.xlu0 %v376_v36  ;;  %v693_v36 = vcvt.s32.f32 %v691_v34 }
 0x205   :  { %v1285_v42 = vpop.xlane.xlu1 %485 }
 0x206   :  { %vm487_vm3 = vcmp.eq.f32.partialorder %v1070_v19, %v1285_v42 }
 0x207   :  { %v488_v58 = vsel %vm487_vm3, %v483_v61, inf  ;;  %vm414_vm3 = vcmask 7168  }
 0x208   :  { %489 = vmin.xlane.f32.xlu1 %v488_v58 }
 0x209   :  { %v1291_v14 = vpop.xlane.xlu1 %605  ;;  %v1296_v55 = vpop.xlane.xlu0 %470 }
 0x20a   :  { %vm607_vm1 = vcmp.eq.f32.partialorder %v1090_v30, %v1291_v14  ;;  %vm472_vm4 = vcmp.eq.f32.partialorder %v1105_v40, %v1296_v55  ;;  %v477_v7 = vcvt.f32.s32 %v1296_v55 }
 0x20b   :  { %v608_v33 = vsel %vm607_vm1, %v603_v46, inf  ;;  %v473_v19 = vsel %vm472_vm4, %v468_v17, inf }
 0x20c   :  { %609 = vmin.xlane.f32.xlu1 %v608_v33  ;;  %474 = vmin.xlane.f32.xlu0 %v473_v19 }
 0x20d   :  { %v1301_v24 = vpop.xlane.xlu1 %515  ;;  %v1306_v27 = vpop.xlane.xlu0 %590 }
 0x20e   :  { %vm517_vm5 = vcmp.eq.f32.partialorder %v1114_v43, %v1301_v24  ;;  %vm592_vm6 = vcmp.eq.f32.partialorder %v1129_v54, %v1306_v27 }
 0x20f   :  { %v518_v30 = vsel %vm517_vm5, %v513_v44, inf  ;;  %v593_v39 = vsel %vm592_vm6, %v588_v62, inf }
 0x210   :  { %519 = vmin.xlane.f32.xlu1 %v518_v30  ;;  %594 = vmin.xlane.f32.xlu0 %v593_v39 }
 0x211   :  { %v1311_v40 = vpop.xlane.xlu1 %635 }
 0x212   :  { %vm637_vm7 = vcmp.eq.f32.partialorder %v1137_v59, %v1311_v40  ;;  %v1315_v41 = vpop.xlane.xlu0 %500 }
 0x213   :  { %v638_v43 = vsel %vm637_vm7, %v633_v25, inf  ;;  %vm502_vm8 = vcmp.eq.f32.partialorder %v1156_v6, %v1315_v41 }
 0x214   :  { %639 = vmin.xlane.f32.xlu1 %v638_v43  ;;  %v503_v54 = vsel %vm502_vm8, %v498_v26, inf }
 0x215   :  { %504 = vmin.xlane.f32.xlu0 %v503_v54 }
 0x216   :  { %v1321_v47 = vpop.xlane.xlu1 %545  ;;  %v1324_v59 = vpop.xlane.xlu0 %620 }
 0x217   :  { %vm547_vm9 = vcmp.eq.f32.partialorder %v1176_v28, %v1321_v47  ;;  %vm622_vm10 = vcmp.eq.f32.partialorder %v1181_v32, %v1324_v59  ;;  %v528_v28 = vcvt.s32.f32 %v526_v4 }
 0x218   :  { %v548_v35 = vsel %vm547_vm9, %v543_v51, inf  ;;  %v623_v5 = vsel %vm622_vm10, %v618_v49, inf }
 0x219   :  { %549 = vmin.xlane.f32.xlu1 %v548_v35  ;;  %624 = vmin.xlane.f32.xlu0 %v623_v5 }
 0x21a   :  { %v1331_v6 = vpop.xlane.xlu1 %665  ;;  %v1334_v9 = vpop.xlane.xlu0 %530 }
 0x21b   :  { %vm667_vm11 = vcmp.eq.f32.partialorder %v1199_v53, %v1331_v6  ;;  %vm532_vm12 = vcmp.eq.f32.partialorder %v1207_v63, %v1334_v9  ;;  %v648_v53 = vcvt.s32.f32 %v646_v20  ;;  %v492_v20 = vcvt.f32.s32 %v1285_v42 }
 0x21c   :  { %v668_v21 = vsel %vm667_vm11, %v663_v23, inf  ;;  %v533_v32 = vsel %vm532_vm12, %v528_v28, inf }
 0x21d   :  { %669 = vmin.xlane.f32.xlu1 %v668_v21  ;;  %534 = vmin.xlane.f32.xlu0 %v533_v32  ;;  %v493_v32 = vshll.u32 %v492_v20, 16 }
 0x21e   :  { %v1341_v37 = vpop.xlane.xlu1 %575  ;;  %v1344_v52 = vpop.xlane.xlu0 %650 }
 0x21f   :  { %vm577_vm13 = vcmp.eq.f32.partialorder %v1224_v11, %v1341_v37  ;;  %vm652_vm14 = vcmp.eq.f32.partialorder %v1232_v22, %v1344_v52  ;;  %v676_v11 = vand.u32 65535, %v1239_v15 }
 0x220   :  { %v578_v48 = vsel %vm577_vm13, %v573_v57, inf  ;;  %v653_v63 = vsel %vm652_vm14, %v648_v53, inf  ;;  %v612_v57 = vcvt.f32.s32 %v1291_v14 }
 0x221   :  { %579 = vmin.xlane.f32.xlu1 %v578_v48  ;;  %654 = vmin.xlane.f32.xlu0 %v653_v63  ;;  %v678_v58 = vcvt.s32.f32 %v676_v11 }
 0x222   :  { %v1351_v0 = vpop.xlane.xlu1 %695  ;;  %v1353_v8 = vpop.xlane.xlu0 %560  ;;  %v613_v63 = vshll.u32 %v612_v57, 16 }
 0x223   :  { %vm697_vm15 = vcmp.eq.f32.partialorder %v1236_v29, %v1351_v0  ;;  %vm562_vm0 = vcmp.eq.f32.partialorder %v1246_v56, %v1353_v8 }
 0x224   :  { %v698_v61 = vsel %vm697_vm15, %v693_v36, inf  ;;  %v563_v31 = vsel %vm562_vm0, %v558_v10, inf  ;;  %v522_v10 = vcvt.f32.s32 %v1301_v24  ;;  %v507_v24 = vcvt.f32.s32 %v1315_v41 }
 0x225   :  { %699 = vmin.xlane.f32.xlu1 %v698_v61  ;;  %564 = vmin.xlane.f32.xlu0 %v563_v31  ;;  %v478_v61 = vshll.u32 %v477_v7, 16  ;;  %v597_v31 = vcvt.f32.s32 %v1306_v27  ;;  %v552_v41 = vcvt.f32.s32 %v1321_v47 }
 0x226   :  { %v339_v22 = vpop.xlane.xlu1 %338  ;;  %v1360_v12 = vpop.xlane.xlu0 %680 }
 0x227   :  { %842 = vrcp.f32 %v339_v22  ;;  %vm682_vm2 = vcmp.eq.f32.partialorder %v1256_v45, %v1360_v12  ;;  %v523_v22 = vshll.u32 %v522_v10, 16 }
 0x228   :  { %v683_v3 = vsel %vm682_vm2, %v678_v58, inf  ;;  %v642_v58 = vcvt.f32.s32 %v1311_v40 }
 0x229   :  { %684 = vmin.xlane.f32.xlu0 %v683_v3 }
 0x22a   :  { %v363_v29 = vpop.xlane.xlu1 %362  ;;  %v336_v15 = vpop.xlane.xlu0 %335 }
 0x22b   :  { %844 = vrcp.f32 %v363_v29 }
 0x22c   :  { %846 = vrcp.f32 %v336_v15 }
 0x22e   :  { %v345_v46 = vpop.xlane.xlu1 %344  ;;  %v360_v56 = vpop.xlane.xlu0 %359 }
 0x22f   :  { %848 = vrcp.f32 %v345_v46  ;;  %v598_v46 = vshll.u32 %v597_v31, 16 }
 0x230   :  { %850 = vrcp.f32 %v360_v56 }
 0x231   :  { %v843_v13 = vpop.eup %842 }
 0x232   :  { %416 = vst.msk [vmem:[%s1511_s4 + $0x8] sm:$0xff] %vm414_vm3, %v843_v13  ;;  %v369_v33 = vpop.xlane.xlu1 %368  ;;  %v342_v45 = vpop.xlane.xlu0 %341 }
 0x233   :  { %852 = vrcp.f32 %v369_v33  ;;  %v643_v33 = vshll.u32 %v642_v58, 16 }
 0x234   :  { %854 = vrcp.f32 %v342_v45 }
 0x235   :  { %v845_v17 = vpop.eup %844 }
 0x236   :  { %v847_v1 = vpop.eup %846  ;;  %424 = vst.msk [vmem:[%s1511_s4 + $0x48] sm:$0xff] %vm414_vm3, %v845_v17  ;;  %v351_v19 = vpop.xlane.xlu1 %350 }
 0x237   :  { %415 = vst.msk [vmem:[%s1511_s4] sm:$0xff] %vm414_vm3, %v847_v1  ;;  %856 = vrcp.f32 %v351_v19  ;;  %v366_v44 = vpop.xlane.xlu0 %365  ;;  %v508_v1 = vshll.u32 %v507_v24, 16 }
 0x238   :  { %858 = vrcp.f32 %v366_v44 }
 0x239   :  { %v849_v60 = vpop.eup %848 }
 0x23a   :  { %v851_v30 = vpop.eup %850  ;;  %418 = vst.msk [vmem:[%s1511_s4 + $0x18] sm:$0xff] %vm414_vm3, %v849_v60  ;;  %v375_v62 = vpop.xlane.xlu1 %374  ;;  %v627_v60 = vcvt.f32.s32 %v1324_v59  ;;  %v537_v59 = vcvt.f32.s32 %v1334_v9 }
 0x23b   :  { %423 = vst.msk [vmem:[%s1511_s4 + $0x40] sm:$0xff] %vm414_vm3, %v851_v30  ;;  %860 = vrcp.f32 %v375_v62  ;;  %v348_v16 = vpop.xlane.xlu0 %347 }
 0x23c   :  { %862 = vrcp.f32 %v348_v16  ;;  %v553_v16 = vshll.u32 %v552_v41, 16 }
 0x23d   :  { %v853_v39 = vpop.eup %852 }
 0x23e   :  { %v855_v25 = vpop.eup %854  ;;  %426 = vst.msk [vmem:[%s1511_s4 + $0x58] sm:$0xff] %vm414_vm3, %v853_v39  ;;  %v357_v43 = vpop.xlane.xlu1 %356  ;;  %v672_v39 = vcvt.f32.s32 %v1331_v6 }
 0x23f   :  { %417 = vst.msk [vmem:[%s1511_s4 + $0x10] sm:$0xff] %vm414_vm3, %v855_v25  ;;  %864 = vrcp.f32 %v357_v43  ;;  %v372_v26 = vpop.xlane.xlu0 %371  ;;  %v628_v43 = vshll.u32 %v627_v60, 16 }
 0x240   :  { %866 = vrcp.f32 %v372_v26 }
 0x241   :  { %v857_v38 = vpop.eup %856 }
 0x242   :  { %v859_v50 = vpop.eup %858  ;;  %420 = vst.msk [vmem:[%s1511_s4 + $0x28] sm:$0xff] %vm414_vm3, %v857_v38  ;;  %v381_v54 = vpop.xlane.xlu1 %380 }
 0x243   :  { %425 = vst.msk [vmem:[%s1511_s4 + $0x50] sm:$0xff] %vm414_vm3, %v859_v50  ;;  %868 = vrcp.f32 %v381_v54  ;;  %v354_v51 = vpop.xlane.xlu0 %353 }
 0x244   :  { %870 = vrcp.f32 %v354_v51  ;;  %v673_v51 = vshll.u32 %v672_v39, 16 }
 0x245   :  { %v861_v2 = vpop.eup %860 }
 0x246   :  { %v863_v49 = vpop.eup %862  ;;  %428 = vst.msk [vmem:[%s1511_s4 + $0x68] sm:$0xff] %vm414_vm3, %v861_v2  ;;  %v582_v2 = vcvt.f32.s32 %v1341_v37 }
 0x247   :  { %419 = vst.msk [vmem:[%s1511_s4 + $0x20] sm:$0xff] %vm414_vm3, %v863_v49  ;;  %v378_v4 = vpop.xlane.xlu0 %377 }
 0x248   :  { %872 = vrcp.f32 %v378_v4  ;;  %v538_v4 = vshll.u32 %v537_v59, 16  ;;  %v583_v37 = vshll.u32 %v582_v2, 16 }
 0x249   :  { %v865_v35 = vpop.eup %864 }
 0x24a   :  { %v867_v5 = vpop.eup %866  ;;  %422 = vst.msk [vmem:[%s1511_s4 + $0x38] sm:$0xff] %vm414_vm3, %v865_v35  ;;  %v657_v35 = vcvt.f32.s32 %v1344_v52 }
 0x24b   :  { %427 = vst.msk [vmem:[%s1511_s4 + $0x60] sm:$0xff] %vm414_vm3, %v867_v5 }
 0x24c   :  { %v658_v52 = vshll.u32 %v657_v35, 16 }
 0x24d   :  { %v869_v23 = vpop.eup %868 }
 0x24e   :  { %v871_v18 = vpop.eup %870  ;;  %430 = vst.msk [vmem:[%s1511_s4 + $0x78] sm:$0xff] %vm414_vm3, %v869_v23 }
 0x24f   :  { %421 = vst.msk [vmem:[%s1511_s4 + $0x30] sm:$0xff] %vm414_vm3, %v871_v18 }
 0x252   :  { %v873_v28 = vpop.eup %872 }
 0x253   :  { %429 = vst.msk [vmem:[%s1511_s4 + $0x70] sm:$0xff] %vm414_vm3, %v873_v28  ;;  %v702_v28 = vcvt.f32.s32 %v1351_v0 }
 0x255   :  { %v703_v0 = vshll.u32 %v702_v28, 16 }
 0x295   :  { %v490_v21 = vpop.xlane.xlu1 %489 }
 0x296   :  { %v491_v34 = vcvt.f32.s32 %v490_v21 }
 0x298   :  { %v494_v53 = vadd.s32 %v493_v32, %v491_v34  ;;  %v567_v32 = vcvt.f32.s32 %v1353_v8  ;;  %v687_v8 = vcvt.f32.s32 %v1360_v12 }
 0x299   :  { %v610_v48 = vpop.xlane.xlu1 %609  ;;  %v475_v42 = vpop.xlane.xlu0 %474 }
 0x29a   :  { %706 = vst.msk [vmem:[%s1512_s3 + $0x8] sm:$0xff] %vm414_vm3, %v494_v53  ;;  %v611_v36 = vcvt.f32.s32 %v610_v48  ;;  %v476_v14 = vcvt.f32.s32 %v475_v42  ;;  %v688_v31 = vshll.u32 %v687_v8, 16 }
 0x29c   :  { %v614_v11 = vadd.s32 %v613_v63, %v611_v36  ;;  %v479_v3 = vadd.s32 %v478_v61, %v476_v14  ;;  %v568_v36 = vshll.u32 %v567_v32, 16 }
 0x29d   :  { %v520_v55 = vpop.xlane.xlu1 %519  ;;  %v595_v15 = vpop.xlane.xlu0 %594 }
 0x29e   :  { %714 = vst.msk [vmem:[%s1512_s3 + $0x48] sm:$0xff] %vm414_vm3, %v614_v11  ;;  %v521_v29 = vcvt.f32.s32 %v520_v55  ;;  %705 = vst.msk [vmem:[%s1512_s3] sm:$0xff] %vm414_vm3, %v479_v3  ;;  %v596_v56 = vcvt.f32.s32 %v595_v15 }
 0x2a0   :  { %v524_v27 = vadd.s32 %v523_v22, %v521_v29  ;;  %v599_v40 = vadd.s32 %v598_v46, %v596_v56 }
 0x2a1   :  { %v640_v13 = vpop.xlane.xlu1 %639 }
 0x2a2   :  { %708 = vst.msk [vmem:[%s1512_s3 + $0x18] sm:$0xff] %vm414_vm3, %v524_v27  ;;  %v641_v45 = vcvt.f32.s32 %v640_v13  ;;  %v505_v17 = vpop.xlane.xlu0 %504  ;;  %713 = vst.msk [vmem:[%s1512_s3 + $0x40] sm:$0xff] %vm414_vm3, %v599_v40 }
 0x2a3   :  { %v506_v44 = vcvt.f32.s32 %v505_v17 }
 0x2a4   :  { %v644_v19 = vadd.s32 %v643_v33, %v641_v45 }
 0x2a5   :  { %v509_v30 = vadd.s32 %v508_v1, %v506_v44 }
 0x2a6   :  { %716 = vst.msk [vmem:[%s1512_s3 + $0x58] sm:$0xff] %vm414_vm3, %v644_v19  ;;  %v550_v62 = vpop.xlane.xlu1 %549  ;;  %v625_v25 = vpop.xlane.xlu0 %624 }
 0x2a7   :  { %707 = vst.msk [vmem:[%s1512_s3 + $0x10] sm:$0xff] %vm414_vm3, %v509_v30  ;;  %v551_v47 = vcvt.f32.s32 %v550_v62  ;;  %v626_v26 = vcvt.f32.s32 %v625_v25 }
 0x2a9   :  { %v554_v38 = vadd.s32 %v553_v16, %v551_v47  ;;  %v629_v50 = vadd.s32 %v628_v43, %v626_v26 }
 0x2aa   :  { %v670_v54 = vpop.xlane.xlu1 %669  ;;  %v535_v49 = vpop.xlane.xlu0 %534 }
 0x2ab   :  { %710 = vst.msk [vmem:[%s1512_s3 + $0x28] sm:$0xff] %vm414_vm3, %v554_v38  ;;  %v671_v6 = vcvt.f32.s32 %v670_v54  ;;  %715 = vst.msk [vmem:[%s1512_s3 + $0x50] sm:$0xff] %vm414_vm3, %v629_v50  ;;  %v536_v9 = vcvt.f32.s32 %v535_v49 }
 0x2ad   :  { %v674_v5 = vadd.s32 %v673_v51, %v671_v6  ;;  %v539_v23 = vadd.s32 %v538_v4, %v536_v9 }
 0x2ae   :  { %v580_v18 = vpop.xlane.xlu1 %579  ;;  %v655_v21 = vpop.xlane.xlu0 %654 }
 0x2af   :  { %718 = vst.msk [vmem:[%s1512_s3 + $0x68] sm:$0xff] %vm414_vm3, %v674_v5  ;;  %v581_v20 = vcvt.f32.s32 %v580_v18  ;;  %709 = vst.msk [vmem:[%s1512_s3 + $0x20] sm:$0xff] %vm414_vm3, %v539_v23  ;;  %v656_v57 = vcvt.f32.s32 %v655_v21 }
 0x2b1   :  { %v584_v34 = vadd.s32 %v583_v37, %v581_v20  ;;  %v659_v53 = vadd.s32 %v658_v52, %v656_v57 }
 0x2b2   :  { %v700_v7 = vpop.xlane.xlu1 %699  ;;  %v565_v63 = vpop.xlane.xlu0 %564 }
 0x2b3   :  { %712 = vst.msk [vmem:[%s1512_s3 + $0x38] sm:$0xff] %vm414_vm3, %v584_v34  ;;  %v701_v48 = vcvt.f32.s32 %v700_v7  ;;  %717 = vst.msk [vmem:[%s1512_s3 + $0x60] sm:$0xff] %vm414_vm3, %v659_v53  ;;  %v566_v10 = vcvt.f32.s32 %v565_v63 }
 0x2b5   :  { %v704_v11 = vadd.s32 %v703_v0, %v701_v48  ;;  %v569_v42 = vadd.s32 %v568_v36, %v566_v10 }
 0x2b6   :  { %v685_v61 = vpop.xlane.xlu0 %684 }
 0x2b7   :  { %720 = vst.msk [vmem:[%s1512_s3 + $0x78] sm:$0xff] %vm414_vm3, %v704_v11  ;;  %711 = vst.msk [vmem:[%s1512_s3 + $0x30] sm:$0xff] %vm414_vm3, %v569_v42  ;;  %v686_v12 = vcvt.f32.s32 %v685_v61 }
 0x2b9   :  { %v689_v14 = vadd.s32 %v688_v31, %v686_v12 }
 0x2bb   :  { %719 = vst.msk [vmem:[%s1512_s3 + $0x70] sm:$0xff] %vm414_vm3, %v689_v14 }

</bundles_post_ra>
